<compile_context>
chip_gen: v5e
topology: v5e:2x2
jax: 0.10.0
libtpu: 0.0.40
codegen_flags: <defaults>
</compile_context>

<pallas_src>
import functools

import jax
import jax.numpy as jnp
from jax import lax
from jax.experimental import pallas as pl
from jax.experimental.pallas import tpu as pltpu

EPS = 1e-5


# ----------------------------------------------------------------------------
# Pallas kernel: folded KxK conv, lane-dense flattened-spatial layout
# ----------------------------------------------------------------------------


def _dbb_conv_kernel(x_ref, w_ref, b_ref, cmask_ref, o_ref, xext_ref, patt_ref,
                     *, k, pad, h, w):
  """One grid step = `nblk` images.

  x_ref:     (nblk, Cin, H*W)             input, f32, lane dim = H*W
  w_ref:     (Cout, KKCpad)               folded weight, bf16 (MXU operand dtype)
  b_ref:     (Cout, 1)                    folded bias, f32
  cmask_ref: (K, H*W)                     per-kw column-validity masks (0/1 f32)
  o_ref:     (nblk, Cout, H*W)            output
  xext_ref:  (nblk, Cin, H*W + 2*margin)  f32 scratch; zero margins = implicit zero pad
  patt_ref:  (KKCpad, nblk*H*W)           f32 scratch; lane-major im2col patches
  """
  nblk, cin, hw = x_ref.shape
  kkc = k * k * cin
  kkc_pad = patt_ref.shape[0]
  margin = pad * (w + 1)

  # Stage the input into the zero-margin extended scratch.  Taps that fall off the top
  # or bottom rows land in the zero margins; only column overflow needs a mask.
  if pad > 0:
    xext_ref[:, :, 0:margin] = jnp.zeros((nblk, cin, margin), jnp.float32)
    xext_ref[:, :, margin + hw:2 * margin + hw] = jnp.zeros(
        (nblk, cin, margin), jnp.float32)
  xext_ref[:, :, margin:margin + hw] = x_ref[...].astype(jnp.float32)

  # im2col: each (kh, kw) tap of each image is ONE contiguous lane slice of xext,
  # column-masked, written into its row range of the lane-major patch buffer.
  # Row order (kh*K + kw)*Cin + c matches the wrapper's weight column order.
  for n in range(nblk):
    for kh in range(k):
      for kw in range(k):
        off = margin + (kh - pad) * w + (kw - pad)
        sl = xext_ref[n, :, off:off + hw]                        # (Cin, H*W)
        if kw != pad:                                            # centre column: no mask
          sl = sl * cmask_ref[kw:kw + 1, :]                      # (1, H*W) broadcast
        r0 = (kh * k + kw) * cin
        patt_ref[r0:r0 + cin, n * hw:(n + 1) * hw] = sl

  if kkc_pad > kkc:                                              # zero tail rows (36->40)
    patt_ref[kkc:kkc_pad, :] = jnp.zeros((kkc_pad - kkc, nblk * hw), jnp.float32)

  # Single MXU dot: (Cout, KKCpad) x (KKCpad, nblk*H*W), bf16 operands, f32 accumulate.
  acc = jnp.dot(w_ref[...], patt_ref[...].astype(w_ref.dtype),
                preferred_element_type=jnp.float32)
  acc = acc + b_ref[...]                                         # bias, lane-broadcast
  for n in range(nblk):
    o_ref[n] = acc[:, n * hw:(n + 1) * hw].astype(o_ref.dtype)   # 256-lane aligned store


def _pick_batch_tile(n):
  """Largest batch tile that keeps >= 2 grid steps (so v7x's two TensorCores both get
  work) while amortizing per-step overhead; capped small since VMEM use is tiny here."""
  cap = max(1, min(n // 2, 8))
  for cand in range(cap, 0, -1):
    if n % cand == 0:
      return cand
  return 1


def dbb_reparam_conv_pallas(x_nchw, w2d, b2d, *, k, stride, padding, batch_tile=None):
  """Run the folded equivalent conv.  x_nchw: (N, Cin, H, W) -> (N, Cout, H, W)."""
  if stride != 1:
    # TODO(synk): stride > 1 (de-interleave columns once, then contiguous slices).
    raise NotImplementedError("stride > 1 not implemented")
  assert k % 2 == 1 and padding == k // 2   # module asserts padding == kernel_size // 2

  n, cin, h, w = x_nchw.shape
  cout = w2d.shape[0]
  kkc_pad = w2d.shape[1]
  hw = h * w
  margin = padding * (w + 1)
  nblk = batch_tile if batch_tile is not None else _pick_batch_tile(n)
  assert n % nblk == 0

  x_flat = x_nchw.reshape(n, cin, hw)               # contiguous reshape, free

  # Per-kw column-validity masks (constant, data-independent): valid iff
  # 0 <= (pos % W) + kw - pad < W.
  col = jnp.arange(hw, dtype=jnp.int32) % w
  cmask = jnp.stack(
      [jnp.logical_and(col >= padding - kw, col < w + padding - kw)
       .astype(jnp.float32) for kw in range(k)], axis=0)          # (K, H*W)

  kern = functools.partial(_dbb_conv_kernel, k=k, pad=padding, h=h, w=w)

  out = pl.pallas_call(
      kern,
      out_shape=jax.ShapeDtypeStruct((n, cout, hw), x_nchw.dtype),
      grid=(n // nblk,),
      in_specs=[
          pl.BlockSpec((nblk, cin, hw), lambda i: (i, 0, 0)),
          pl.BlockSpec((cout, kkc_pad), lambda i: (0, 0)),
          pl.BlockSpec((cout, 1), lambda i: (0, 0)),
          pl.BlockSpec((k, hw), lambda i: (0, 0)),
      ],
      out_specs=pl.BlockSpec((nblk, cout, hw), lambda i: (i, 0, 0)),
      scratch_shapes=[
          pltpu.VMEM((nblk, cin, hw + 2 * margin), jnp.float32),   # zero-margin image
          pltpu.VMEM((kkc_pad, nblk * hw), jnp.float32),           # lane-major patches
      ],
      compiler_params=pltpu.CompilerParams(
          dimension_semantics=("parallel",)),        # batch steps across TCs (v7x)
  )(x_flat, w2d, b2d, cmask)

  return out.reshape(n, cout, h, w)                  # contiguous reshape, free


# ----------------------------------------------------------------------------
# Branch folding (exact DBB re-parameterization for eval-mode BN), done ONCE
# ----------------------------------------------------------------------------


def fuse_bn(w_oihw, bn):
  """Fold eval-mode BatchNorm into a bias-free conv.  Returns (w', b')."""
  gamma, beta, mean, var = bn
  t = gamma / jnp.sqrt(var + EPS)
  return w_oihw * t[:, None, None, None], beta - mean * t


def dbb_equivalent_weight_bias(p, cin, cout, k):
  """Fold the 4 DBB branches into one (Cout, Cin, K, K) weight and (Cout,) bias."""
  pad = k // 2

  # dbb_origin: KxK conv + BN
  k_o, b_o = fuse_bn(p['w_o'], p['bn_o'])

  # dbb_1x1: 1x1 conv + BN  ->  KxK kernel with the 1x1 placed at the centre
  k_1, b_1 = fuse_bn(p['w_1'], p['bn_1'])
  k_1 = jnp.pad(k_1, ((0, 0), (0, 0), (pad, pad), (pad, pad)))

  # dbb_1x1_kxk: IdentityBasedConv1x1 + BNAndPad + KxK (pad 0) + BN.
  # BNAndPad pads the intermediate with exactly the folded bias, so the merge into a
  # single KxK conv on zero-padded x is exact (transIII_1x1_kxk).
  kid = p['w_id'] + jnp.eye(cin, dtype=jnp.float32).reshape(cin, cin, 1, 1)
  ka1, ba1 = fuse_bn(kid, p['bn_b1'])                 # (cin, cin, 1, 1), (cin,)
  ka2, ba2 = fuse_bn(p['w_k2'], p['bn_b2'])           # (cout, cin, k, k), (cout,)
  k_kk = jnp.einsum('ochw,ci->oihw', ka2, ka1[:, :, 0, 0])
  b_kk = jnp.einsum('ochw,c->o', ka2, ba1) + ba2

  # dbb_avg: 1x1 conv + BNAndPad + AvgPool(k, stride, pad 0) + BN.
  # AvgPool == uniform KxK conv with weight 1/k^2; merged with the 1x1 and both BNs.
  kv1, bv1 = fuse_bn(p['w_a'], p['bn_a'])             # (cout, cin, 1, 1), (cout,)
  g, be, m, v = p['bn_avg']
  t = g / jnp.sqrt(v + EPS)
  k_av = ((t[:, None] * kv1[:, :, 0, 0]) / float(k * k))[:, :, None, None]
  k_av = k_av * jnp.ones((1, 1, k, k), jnp.float32)
  b_av = t * bv1 + (be - m * t)

  return k_o + k_1 + k_kk + k_av, b_o + b_1 + b_kk + b_av


def dbb_prepare_deploy(params, cin, cout, k, compute_dtype=jnp.bfloat16):
  """switch_to_deploy equivalent: fold once, offline, and lay the weight out for the
  kernel (column order (kh*K + kw)*Cin + c, contraction dim padded to a multiple of 8).
  Returns kernel-ready (w2d, b2d) plus the raw folded (w_eq, b_eq)."""
  w_eq, b_eq = dbb_equivalent_weight_bias(params, cin, cout, k)
  kkc = k * k * cin
  kkc_pad = ((kkc + 7) // 8) * 8
  w2d = jnp.transpose(w_eq, (0, 2, 3, 1)).reshape(cout, kkc)
  w2d = jnp.pad(w2d, ((0, 0), (0, kkc_pad - kkc))).astype(compute_dtype)
  b2d = b_eq.reshape(cout, 1).astype(jnp.float32)
  return w2d, b2d, w_eq, b_eq


# ----------------------------------------------------------------------------
# Pure-JAX reference (mirrors the torch forward op-by-op, eval-mode BN)
# ----------------------------------------------------------------------------


def _conv_nchw(x, w, stride, padding):
  return lax.conv_general_dilated(
      x, w, (stride, stride), [(padding, padding), (padding, padding)],
      dimension_numbers=('NCHW', 'OIHW', 'NCHW'),
      precision=lax.Precision.HIGHEST)


def _bn_eval(y, bn):
  g, b, m, v = bn
  t = g / jnp.sqrt(v + EPS)
  return y * t[None, :, None, None] + (b - m * t)[None, :, None, None]


def _pad_channels_nchw(x, pad, pv):
  n, c, h, w = x.shape
  out = jnp.broadcast_to(pv.reshape(1, c, 1, 1), (n, c, h + 2 * pad, w + 2 * pad))
  return out.at[:, :, pad:pad + h, pad:pad + w].set(x)


def _avgpool_nchw(x, k, s):
  return lax.reduce_window(x, 0.0, lax.add, (1, 1, k, k), (1, 1, s, s),
                           'VALID') / float(k * k)


def dbb_forward_ref(x, p, k, stride, padding):
  cin = x.shape[1]
  out = _bn_eval(_conv_nchw(x, p['w_o'], stride, padding), p['bn_o'])
  out = out + _bn_eval(_conv_nchw(x, p['w_1'], stride, 0), p['bn_1'])

  g, b, m, v = p['bn_a']
  pv = b - m * g / jnp.sqrt(v + EPS)
  y = _bn_eval(_conv_nchw(x, p['w_a'], 1, 0), p['bn_a'])
  y = _pad_channels_nchw(y, padding, pv)
  y = _avgpool_nchw(y, k, stride)
  out = out + _bn_eval(y, p['bn_avg'])

  kid = p['w_id'] + jnp.eye(cin, dtype=jnp.float32).reshape(cin, cin, 1, 1)
  g, b, m, v = p['bn_b1']
  pv = b - m * g / jnp.sqrt(v + EPS)
  y = _bn_eval(_conv_nchw(x, kid, 1, 0), p['bn_b1'])
  y = _pad_channels_nchw(y, padding, pv)
  y = _bn_eval(_conv_nchw(y, p['w_k2'], stride, 0), p['bn_b2'])
  return out + y                                      # nonlinear = Identity


# ----------------------------------------------------------------------------
# Parameters (deterministic) and test driver
# ----------------------------------------------------------------------------


class _KeyGen:
  """Never-exhausting deterministic key stream."""

  def __init__(self, key):
    self._key = key

  def __call__(self):
    self._key, sub = jax.random.split(self._key)
    return sub


def make_params(key, cin, cout, k):
  nk = _KeyGen(key)

  def bn(n):
    return (0.5 + jax.random.uniform(nk(), (n,), jnp.float32),   # gamma
            0.1 * jax.random.normal(nk(), (n,), jnp.float32),    # beta
            0.1 * jax.random.normal(nk(), (n,), jnp.float32),    # running_mean
            0.5 + jax.random.uniform(nk(), (n,), jnp.float32))   # running_var

  p = {}
  p['w_o'] = 0.3 * jax.random.normal(nk(), (cout, cin, k, k), jnp.float32)
  p['bn_o'] = bn(cout)
  p['w_1'] = 0.3 * jax.random.normal(nk(), (cout, cin, 1, 1), jnp.float32)
  p['bn_1'] = bn(cout)
  p['w_a'] = 0.3 * jax.random.normal(nk(), (cout, cin, 1, 1), jnp.float32)
  p['bn_a'] = bn(cout)
  p['bn_avg'] = bn(cout)
  p['w_id'] = 0.1 * jax.random.normal(nk(), (cin, cin, 1, 1), jnp.float32)
  p['bn_b1'] = bn(cin)
  p['w_k2'] = 0.3 * jax.random.normal(nk(), (cout, cin, k, k), jnp.float32)
  p['bn_b2'] = bn(cout)
  return p


if __name__ == '__main__':
  IN_CH, OUT_CH, K, STRIDE, PADDING = 4, 8, 3, 1, 1   # padding == K // 2 (module assert)
  N, H, W = 2, 16, 16

  key = jax.random.PRNGKey(0)
  kx, kp = jax.random.split(key)
  x = jax.random.normal(kx, (N, IN_CH, H, W), jnp.float32)
  params = make_params(kp, IN_CH, OUT_CH, K)

  # Fold the four branches ONCE, outside the per-forward jit (switch_to_deploy).
  w2d, b2d, w_eq, b_eq = jax.block_until_ready(
      dbb_prepare_deploy(params, IN_CH, OUT_CH, K, compute_dtype=jnp.bfloat16))

  fwd = jax.jit(functools.partial(dbb_reparam_conv_pallas, k=K, stride=STRIDE,
                                  padding=PADDING))
  out = jax.block_until_ready(fwd(x, w2d, b2d))

  # Check 1 (semantic): exact per-branch forward in f32.  The only expected difference
  # is the bf16 rounding of the two MXU operands (estimated max ~4e-2 at these scales);
  # a folding/indexing bug would show up as O(1) errors.
  ref = dbb_forward_ref(x, params, K, STRIDE, PADDING)
  err_sem = float(jnp.max(jnp.abs(out - ref)))

  # Check 2 (tight): the same folded conv with operands rounded to bf16 exactly as the
  # kernel's MXU sees them (f32 accumulation in both) -> isolates any kernel layout,
  # masking or im2col error to well below 1e-3.
  x_bf = x.astype(jnp.bfloat16).astype(jnp.float32)
  w_bf = w_eq.astype(jnp.bfloat16).astype(jnp.float32)
  ref_bf = _conv_nchw(x_bf, w_bf, STRIDE, PADDING) + b_eq.reshape(1, -1, 1, 1)
  err_tight = float(jnp.max(jnp.abs(out - ref_bf)))

  ok = out.shape == (N, OUT_CH, H, W) and err_tight < 1e-3 and err_sem < 1e-1
  if not ok:
    raise RuntimeError(
        f'mismatch: shape={out.shape}, err_tight={err_tight}, err_sem={err_sem}')

  print("KERNEL_OK")
</pallas_src>

<mosaic_0001>
module attributes {stable_mosaic.version = 11 : i64} {
  func.func @_dbb_conv_kernel(%arg0: i32, %arg1: memref<1x4x256xf32, #tpu.memory_space<vmem>>, %arg2: memref<8x40xbf16, #tpu.memory_space<vmem>>, %arg3: memref<8x1xf32, #tpu.memory_space<vmem>>, %arg4: memref<3x256xf32, #tpu.memory_space<vmem>>, %arg5: memref<1x8x256xf32, #tpu.memory_space<vmem>>, %arg6: memref<1x4x290xf32, #tpu.memory_space<vmem>>, %arg7: memref<40x256xf32, #tpu.memory_space<vmem>>) attributes {dimension_semantics = [#tpu.dimension_semantics<parallel>], iteration_bounds = array<i64: 2>, scalar_prefetch = 0 : i64, scratch_operands = 2 : i64, tpu.core_type = #tpu.core_type<tc>, window_params = [{transform_indices = @transform_0, window_bounds = array<i64: 1, 4, 256>}, {pipeline_mode = #tpu.pipeline_mode<synchronous>, transform_indices = @transform_1, window_bounds = array<i64: 8, 40>}, {pipeline_mode = #tpu.pipeline_mode<synchronous>, transform_indices = @transform_2, window_bounds = array<i64: 8, 1>}, {pipeline_mode = #tpu.pipeline_mode<synchronous>, transform_indices = @transform_3, window_bounds = array<i64: 3, 256>}, {transform_indices = @transform_4, window_bounds = array<i64: 1, 8, 256>}]} {
    %cst = arith.constant 0.000000e+00 : f32
    %0 = vector.broadcast %cst : f32 to vector<1x4x17xf32>
    %c0 = arith.constant 0 : index
    %c0_0 = arith.constant 0 : index
    %c0_1 = arith.constant 0 : index
    %1 = vector.load %arg6[%c0, %c0_0, %c0_1] : memref<1x4x290xf32, #tpu.memory_space<vmem>>, vector<1x4x17xf32>
    tpu.vector_store %arg6[%c0, %c0_0, %c0_1], %0 {strides = array<i32>} : memref<1x4x290xf32, #tpu.memory_space<vmem>>, vector<1x4x17xf32>,
    %cst_2 = arith.constant 0.000000e+00 : f32
    %2 = vector.broadcast %cst_2 : f32 to vector<1x4x17xf32>
    %c0_3 = arith.constant 0 : index
    %c0_4 = arith.constant 0 : index
    %c273 = arith.constant 273 : index
    %3 = vector.load %arg6[%c0_3, %c0_4, %c273] : memref<1x4x290xf32, #tpu.memory_space<vmem>>, vector<1x4x17xf32>
    tpu.vector_store %arg6[%c0_3, %c0_4, %c273], %2 {strides = array<i32>} : memref<1x4x290xf32, #tpu.memory_space<vmem>>, vector<1x4x17xf32>,
    %c0_5 = arith.constant 0 : index
    %c0_6 = arith.constant 0 : index
    %c0_7 = arith.constant 0 : index
    %4 = vector.load %arg1[%c0_5, %c0_6, %c0_7] : memref<1x4x256xf32, #tpu.memory_space<vmem>>, vector<1x4x256xf32>
    %c0_8 = arith.constant 0 : index
    %c0_9 = arith.constant 0 : index
    %c17 = arith.constant 17 : index
    %5 = vector.load %arg6[%c0_8, %c0_9, %c17] : memref<1x4x290xf32, #tpu.memory_space<vmem>>, vector<1x4x256xf32>
    tpu.vector_store %arg6[%c0_8, %c0_9, %c17], %4 {strides = array<i32>} : memref<1x4x290xf32, #tpu.memory_space<vmem>>, vector<1x4x256xf32>,
    %c0_10 = arith.constant 0 : index
    %c0_11 = arith.constant 0 : index
    %c0_12 = arith.constant 0 : index
    %6 = vector.load %arg6[%c0_10, %c0_11, %c0_12] : memref<1x4x290xf32, #tpu.memory_space<vmem>>, vector<1x4x256xf32>
    %7 = vector.shape_cast %6 : vector<1x4x256xf32> to vector<4x256xf32>
    %c0_13 = arith.constant 0 : index
    %c0_14 = arith.constant 0 : index
    %8 = vector.load %arg4[%c0_13, %c0_14] : memref<3x256xf32, #tpu.memory_space<vmem>>, vector<1x256xf32>
    %9 = vector.broadcast %8 : vector<1x256xf32> to vector<4x256xf32>
    %10 = arith.mulf %7, %9 : vector<4x256xf32>
    %c0_15 = arith.constant 0 : index
    %c0_16 = arith.constant 0 : index
    %11 = vector.load %arg7[%c0_15, %c0_16] : memref<40x256xf32, #tpu.memory_space<vmem>>, vector<4x256xf32>
    tpu.vector_store %arg7[%c0_15, %c0_16], %10 {strides = array<i32>} : memref<40x256xf32, #tpu.memory_space<vmem>>, vector<4x256xf32>,
    %c0_17 = arith.constant 0 : index
    %c0_18 = arith.constant 0 : index
    %c1 = arith.constant 1 : index
    %12 = vector.load %arg6[%c0_17, %c0_18, %c1] : memref<1x4x290xf32, #tpu.memory_space<vmem>>, vector<1x4x256xf32>
    %13 = vector.shape_cast %12 : vector<1x4x256xf32> to vector<4x256xf32>
    %c4 = arith.constant 4 : index
    %c0_19 = arith.constant 0 : index
    %14 = vector.load %arg7[%c4, %c0_19] : memref<40x256xf32, #tpu.memory_space<vmem>>, vector<4x256xf32>
    tpu.vector_store %arg7[%c4, %c0_19], %13 {strides = array<i32>} : memref<40x256xf32, #tpu.memory_space<vmem>>, vector<4x256xf32>,
    %c0_20 = arith.constant 0 : index
    %c0_21 = arith.constant 0 : index
    %c2 = arith.constant 2 : index
    %15 = vector.load %arg6[%c0_20, %c0_21, %c2] : memref<1x4x290xf32, #tpu.memory_space<vmem>>, vector<1x4x256xf32>
    %16 = vector.shape_cast %15 : vector<1x4x256xf32> to vector<4x256xf32>
    %c2_22 = arith.constant 2 : index
    %c0_23 = arith.constant 0 : index
    %17 = vector.load %arg4[%c2_22, %c0_23] : memref<3x256xf32, #tpu.memory_space<vmem>>, vector<1x256xf32>
    %18 = vector.broadcast %17 : vector<1x256xf32> to vector<4x256xf32>
    %19 = arith.mulf %16, %18 : vector<4x256xf32>
    %c8 = arith.constant 8 : index
    %c0_24 = arith.constant 0 : index
    %20 = vector.load %arg7[%c8, %c0_24] : memref<40x256xf32, #tpu.memory_space<vmem>>, vector<4x256xf32>
    tpu.vector_store %arg7[%c8, %c0_24], %19 {strides = array<i32>} : memref<40x256xf32, #tpu.memory_space<vmem>>, vector<4x256xf32>,
    %c0_25 = arith.constant 0 : index
    %c0_26 = arith.constant 0 : index
    %c16 = arith.constant 16 : index
    %21 = vector.load %arg6[%c0_25, %c0_26, %c16] : memref<1x4x290xf32, #tpu.memory_space<vmem>>, vector<1x4x256xf32>
    %22 = vector.shape_cast %21 : vector<1x4x256xf32> to vector<4x256xf32>
    %c0_27 = arith.constant 0 : index
    %c0_28 = arith.constant 0 : index
    %23 = vector.load %arg4[%c0_27, %c0_28] : memref<3x256xf32, #tpu.memory_space<vmem>>, vector<1x256xf32>
    %24 = vector.broadcast %23 : vector<1x256xf32> to vector<4x256xf32>
    %25 = arith.mulf %22, %24 : vector<4x256xf32>
    %c12 = arith.constant 12 : index
    %c0_29 = arith.constant 0 : index
    %26 = vector.load %arg7[%c12, %c0_29] : memref<40x256xf32, #tpu.memory_space<vmem>>, vector<4x256xf32>
    tpu.vector_store %arg7[%c12, %c0_29], %25 {strides = array<i32>} : memref<40x256xf32, #tpu.memory_space<vmem>>, vector<4x256xf32>,
    %c0_30 = arith.constant 0 : index
    %c0_31 = arith.constant 0 : index
    %c17_32 = arith.constant 17 : index
    %27 = vector.load %arg6[%c0_30, %c0_31, %c17_32] : memref<1x4x290xf32, #tpu.memory_space<vmem>>, vector<1x4x256xf32>
    %28 = vector.shape_cast %27 : vector<1x4x256xf32> to vector<4x256xf32>
    %c16_33 = arith.constant 16 : index
    %c0_34 = arith.constant 0 : index
    %29 = vector.load %arg7[%c16_33, %c0_34] : memref<40x256xf32, #tpu.memory_space<vmem>>, vector<4x256xf32>
    tpu.vector_store %arg7[%c16_33, %c0_34], %28 {strides = array<i32>} : memref<40x256xf32, #tpu.memory_space<vmem>>, vector<4x256xf32>,
    %c0_35 = arith.constant 0 : index
    %c0_36 = arith.constant 0 : index
    %c18 = arith.constant 18 : index
    %30 = vector.load %arg6[%c0_35, %c0_36, %c18] : memref<1x4x290xf32, #tpu.memory_space<vmem>>, vector<1x4x256xf32>
    %31 = vector.shape_cast %30 : vector<1x4x256xf32> to vector<4x256xf32>
    %c2_37 = arith.constant 2 : index
    %c0_38 = arith.constant 0 : index
    %32 = vector.load %arg4[%c2_37, %c0_38] : memref<3x256xf32, #tpu.memory_space<vmem>>, vector<1x256xf32>
    %33 = vector.broadcast %32 : vector<1x256xf32> to vector<4x256xf32>
    %34 = arith.mulf %31, %33 : vector<4x256xf32>
    %c20 = arith.constant 20 : index
    %c0_39 = arith.constant 0 : index
    %35 = vector.load %arg7[%c20, %c0_39] : memref<40x256xf32, #tpu.memory_space<vmem>>, vector<4x256xf32>
    tpu.vector_store %arg7[%c20, %c0_39], %34 {strides = array<i32>} : memref<40x256xf32, #tpu.memory_space<vmem>>, vector<4x256xf32>,
    %c0_40 = arith.constant 0 : index
    %c0_41 = arith.constant 0 : index
    %c32 = arith.constant 32 : index
    %36 = vector.load %arg6[%c0_40, %c0_41, %c32] : memref<1x4x290xf32, #tpu.memory_space<vmem>>, vector<1x4x256xf32>
    %37 = vector.shape_cast %36 : vector<1x4x256xf32> to vector<4x256xf32>
    %c0_42 = arith.constant 0 : index
    %c0_43 = arith.constant 0 : index
    %38 = vector.load %arg4[%c0_42, %c0_43] : memref<3x256xf32, #tpu.memory_space<vmem>>, vector<1x256xf32>
    %39 = vector.broadcast %38 : vector<1x256xf32> to vector<4x256xf32>
    %40 = arith.mulf %37, %39 : vector<4x256xf32>
    %c24 = arith.constant 24 : index
    %c0_44 = arith.constant 0 : index
    %41 = vector.load %arg7[%c24, %c0_44] : memref<40x256xf32, #tpu.memory_space<vmem>>, vector<4x256xf32>
    tpu.vector_store %arg7[%c24, %c0_44], %40 {strides = array<i32>} : memref<40x256xf32, #tpu.memory_space<vmem>>, vector<4x256xf32>,
    %c0_45 = arith.constant 0 : index
    %c0_46 = arith.constant 0 : index
    %c33 = arith.constant 33 : index
    %42 = vector.load %arg6[%c0_45, %c0_46, %c33] : memref<1x4x290xf32, #tpu.memory_space<vmem>>, vector<1x4x256xf32>
    %43 = vector.shape_cast %42 : vector<1x4x256xf32> to vector<4x256xf32>
    %c28 = arith.constant 28 : index
    %c0_47 = arith.constant 0 : index
    %44 = vector.load %arg7[%c28, %c0_47] : memref<40x256xf32, #tpu.memory_space<vmem>>, vector<4x256xf32>
    tpu.vector_store %arg7[%c28, %c0_47], %43 {strides = array<i32>} : memref<40x256xf32, #tpu.memory_space<vmem>>, vector<4x256xf32>,
    %c0_48 = arith.constant 0 : index
    %c0_49 = arith.constant 0 : index
    %c34 = arith.constant 34 : index
    %45 = vector.load %arg6[%c0_48, %c0_49, %c34] : memref<1x4x290xf32, #tpu.memory_space<vmem>>, vector<1x4x256xf32>
    %46 = vector.shape_cast %45 : vector<1x4x256xf32> to vector<4x256xf32>
    %c2_50 = arith.constant 2 : index
    %c0_51 = arith.constant 0 : index
    %47 = vector.load %arg4[%c2_50, %c0_51] : memref<3x256xf32, #tpu.memory_space<vmem>>, vector<1x256xf32>
    %48 = vector.broadcast %47 : vector<1x256xf32> to vector<4x256xf32>
    %49 = arith.mulf %46, %48 : vector<4x256xf32>
    %c32_52 = arith.constant 32 : index
    %c0_53 = arith.constant 0 : index
    %50 = vector.load %arg7[%c32_52, %c0_53] : memref<40x256xf32, #tpu.memory_space<vmem>>, vector<4x256xf32>
    tpu.vector_store %arg7[%c32_52, %c0_53], %49 {strides = array<i32>} : memref<40x256xf32, #tpu.memory_space<vmem>>, vector<4x256xf32>,
    %cst_54 = arith.constant 0.000000e+00 : f32
    %51 = vector.broadcast %cst_54 : f32 to vector<4x256xf32>
    %c36 = arith.constant 36 : index
    %c0_55 = arith.constant 0 : index
    %52 = vector.load %arg7[%c36, %c0_55] : memref<40x256xf32, #tpu.memory_space<vmem>>, vector<4x256xf32>
    tpu.vector_store %arg7[%c36, %c0_55], %51 {strides = array<i32>} : memref<40x256xf32, #tpu.memory_space<vmem>>, vector<4x256xf32>,
    %c0_56 = arith.constant 0 : index
    %c0_57 = arith.constant 0 : index
    %53 = vector.load %arg2[%c0_56, %c0_57] : memref<8x40xbf16, #tpu.memory_space<vmem>>, vector<8x40xbf16>
    %c0_58 = arith.constant 0 : index
    %c0_59 = arith.constant 0 : index
    %54 = vector.load %arg7[%c0_58, %c0_59] : memref<40x256xf32, #tpu.memory_space<vmem>>, vector<40x256xf32>
    %55 = arith.truncf %54 : vector<40x256xf32> to vector<40x256xbf16>
    %cst_60 = arith.constant dense<0.000000e+00> : vector<8x256xf32>
    %56 = tpu.matmul %53, %55, %cst_60 {dimension_numbers = #tpu.dot_dimension_numbers<[1], [0], [0], [1], [0, 0, 1, 1], [], []>} : vector<8x40xbf16>, vector<40x256xbf16>, vector<8x256xf32> -> vector<8x256xf32>
    %c0_61 = arith.constant 0 : index
    %c0_62 = arith.constant 0 : index
    %57 = vector.load %arg3[%c0_61, %c0_62] : memref<8x1xf32, #tpu.memory_space<vmem>>, vector<8x1xf32>
    %58 = vector.broadcast %57 : vector<8x1xf32> to vector<8x256xf32>
    %59 = arith.addf %56, %58 : vector<8x256xf32>
    %c0_63 = arith.constant 0 : index
    %c0_64 = arith.constant 0 : index
    %c0_65 = arith.constant 0 : index
    %60 = vector.load %arg5[%c0_63, %c0_64, %c0_65] : memref<1x8x256xf32, #tpu.memory_space<vmem>>, vector<1x8x256xf32>
    %61 = vector.shape_cast %60 : vector<1x8x256xf32> to vector<8x256xf32>
    %62 = vector.shape_cast %59 : vector<8x256xf32> to vector<1x8x256xf32>
    tpu.vector_store %arg5[%c0_63, %c0_64, %c0_65], %62 {strides = array<i32>} : memref<1x8x256xf32, #tpu.memory_space<vmem>>, vector<1x8x256xf32>,
    return
  }
  func.func @transform_0(%arg0: i32) -> (i32, i32, i32) {
    %c0_i32 = arith.constant 0 : i32
    %c0_i32_0 = arith.constant 0 : i32
    %c0_i32_1 = arith.constant 0 : i32
    return %arg0, %c0_i32, %c0_i32_0 : i32, i32, i32
  }
  func.func @transform_1(%arg0: i32) -> (i32, i32) {
    %c0_i32 = arith.constant 0 : i32
    %c0_i32_0 = arith.constant 0 : i32
    %c0_i32_1 = arith.constant 0 : i32
    return %c0_i32, %c0_i32_0 : i32, i32
  }
  func.func @transform_2(%arg0: i32) -> (i32, i32) {
    %c0_i32 = arith.constant 0 : i32
    %c0_i32_0 = arith.constant 0 : i32
    %c0_i32_1 = arith.constant 0 : i32
    return %c0_i32, %c0_i32_0 : i32, i32
  }
  func.func @transform_3(%arg0: i32) -> (i32, i32) {
    %c0_i32 = arith.constant 0 : i32
    %c0_i32_0 = arith.constant 0 : i32
    %c0_i32_1 = arith.constant 0 : i32
    return %c0_i32, %c0_i32_0 : i32, i32
  }
  func.func @transform_4(%arg0: i32) -> (i32, i32, i32) {
    %c0_i32 = arith.constant 0 : i32
    %c0_i32_0 = arith.constant 0 : i32
    %c0_i32_1 = arith.constant 0 : i32
    return %arg0, %c0_i32, %c0_i32_0 : i32, i32, i32
  }
}

</mosaic_0001>

<bundles_post_ra>
// kernel: dbb_reparam_conv_pallas.1
= control target key start
LH: loop header
LB: loop body
LE: loop exit
PB: predicated region body
PF: predicated region fallthrough
CT: control target
= control target key end

     0   :  { %s709_s15 = smov 0   ;;  %s788_s0 = inlined_call_operand.vmem [shape: f32[2,4,256], index: 0, kind: input, shape index: {}]   ;;  %s789_s1 = inlined_call_operand.vmem [shape: bf16[8,40], index: 1, kind: input, shape index: {}]   ;;  %s790_s2 = inlined_call_operand.vmem [shape: f32[8,1], index: 2, kind: input, shape index: {}]   ;;  %s791_s3 = inlined_call_operand.vmem [shape: f32[3,256], index: 3, kind: input, shape index: {}]   ;;  %s792_s4 = inlined_call_operand.vmem [shape: f32[2,8,256], index: 4, kind: output, shape index: {}]  }
   0x1 LB: > { %s617_s16 = sadd.s32 4294967295, %s666_s15   ;;  %p621_p0 = scmp.ge.s32.totalorder %s666_s15, 1  ;;  %s666_s15 = sphi %s709_s15, %s14_s15  }
   0x2   : > { %p162_p1 = scmp.lt.s32.totalorder %s666_s15, 3 }
   0x4   : > { %p163_p2 = pnand %p621_p0, %p162_p1 }
   0x5   : > { %p188_p3 = scmp.lt.s32.totalorder (!%p163_p2), %s617_s16, 1  ;;  %s668_s29 = smov (!%p163_p2), 16  }
   0x6   : > { %166 = sbr.rel (%p163_p2) target bundleno = 496 (0x1f0), region = 36  ;;  %s669_s6 = smov (!%p163_p2), 17  }
   0x7   : > { %s670_s7 = smov (!%p163_p2), 32   ;;  %s671_s8 = smov (!%p163_p2), 18  }
   0x8   : > { %s672_s9 = smov (!%p163_p2), 2   ;;  %s673_s10 = smov (!%p163_p2), 34  }
   0x9   : > { %s675_s13 = smov (!%p163_p2), 127   ;;  %s676_s14 = smov (!%p163_p2), 111  }
   0xa   : > { %s677_s17 = smov (!%p163_p2), 110   ;;  %s678_s18 = smov (!%p163_p2), 96  }
   0xb   : > { %v300_v0 = vld [vmem:[%s791_s3] ss:$4 sm:$0x3]  ;;  %vm223_vm0 = vcmask 1043456   ;;  %s794_s16 = smov (!%p188_p3, %s617_s16), 1  ;;  %vm201_vm1 = vcmask 273544  }
   0xc   : > { %v302_v1 = vperm.slane %v300_v0, 0  ;;  %v303_v2 = vperm.slane %v300_v0, 1  ;;  %v627_v3 = vld [vmem:[%s791_s3 + $0x2] ss:$4 sm:$0x3]  ;;  %s633_s21 = sshll.u32 %s794_s16, 3 }
   0xd   : > { %v365_v5 = vperm.slane %v627_v3, 1  ;;  %v626_v6 = vld [vmem:[%s791_s3 + $0x2] ss:$4 sm:$0x3]  ;;  %s192_s26 = scalar_lea.vmem %s788_s0, %s633_s21  ;;  %v364_v14 = vperm.slane %v627_v3, 0  ;;  %vm199_vm2 = vcmask 134144  }
   0xe   : > { %v304_v4 = vrot.slane %v303_v2, 4  ;;  %v265_v8 = vperm.slane %v626_v6, 1  ;;  %v401_v9 = vld [vmem:[%s791_s3] ss:$4 sm:$0x3]  ;;  %v264_v16 = vperm.slane %v626_v6, 0 }
   0xf   : > { %v203_v10 = vld [vmem:[%s192_s26] sm:$0xff]  ;;  %v403_v11 = vperm.slane %v401_v9, 0  ;;  %v404_v12 = vperm.slane %v401_v9, 1  ;;  %v366_v15 = vrot.slane %v365_v5, 4  ;;  %v674_v26 = vmov 0.0   ;;  %s679_s19 = smov 95  }
  0x10   : > { %v305_v7 = vsel %vm223_vm0, %v302_v1, %v304_v4  ;;  %v628_v13 = vld [vmem:[%s791_s3 + $0x2] ss:$4 sm:$0x3]  ;;  %205 = vrot.lane.b32.xlu0 %v203_v10, %s669_s6  ;;  %v266_v17 = vrot.slane %v265_v8, 4  ;;  %202 = vst.msk [vmem:[#allocation2 + $0x8] sm:$0xf] %vm201_vm1, %v674_v26 }
  0x11   : > { %306 = vrot.lane.b32.xlu1 %v305_v7, %s668_s29  ;;  %v405_v18 = vrot.slane %v404_v12, 4  ;;  %v466_v19 = vperm.slane %v628_v13, 1  ;;  %v367_v21 = vsel %vm223_vm0, %v364_v14, %v366_v15  ;;  %v465_v23 = vperm.slane %v628_v13, 0  ;;  %200 = vst.msk [vmem:[#allocation2] sm:$0xf] %vm199_vm2, %v674_v26  ;;  %s680_s20 = smov 94  }
  0x12   : > { %v267_v22 = vsel %vm223_vm0, %v264_v16, %v266_v17  ;;  %499 = vst [vmem:[#allocation3 + $0x40] sm:$0xf0] %v674_v26  ;;  %v218_v27 = vld [vmem:[%s791_s3] ss:$4 sm:$0x3]  ;;  %vm212_vm3 = vcmask 1043592  }
  0x13   : > { %v406_v20 = vsel %vm223_vm0, %v403_v11, %v405_v18  ;;  %v467_v24 = vrot.slane %v466_v19, 4  ;;  %500 = vst [vmem:[#allocation3 + $0x38] sm:$0xf0] %v674_v26  ;;  %vm213_vm4 = vcmask 1047556   ;;  %vm208_vm5 = vcmask 138240   ;;  %s681_s21 = smov 126  }
  0x14   : > { %407 = vrot.lane.b32.xlu2 %v406_v20, %s670_s7  ;;  %v221_v29 = vperm.slane %v218_v27, 1  ;;  %vm214_vm6 = vmor %vm213_vm4, %vm212_vm3  ;;  %v220_v32 = vperm.slane %v218_v27, 0  ;;  %vm271_vm7 = vcmask 15360   ;;  %vm309_vm8 = vcmask 130048   ;;  %s682_s22 = smov 112   ;;  %s634_s27 = sshll.u32 %s794_s16, 4 }
  0x15   : > { %v468_v25 = vsel %vm223_vm0, %v465_v23, %v467_v24  ;;  %vm371_vm9 = vcmask 146432   ;;  %vm410_vm10 = vcmask 261120   ;;  %vm472_vm11 = vcmask 277504   ;;  %s197_s30 = scalar_lea.vmem %s792_s4, %s634_s27 }
  0x16   : > { %v222_v33 = vrot.slane %v221_v29, 4  ;;  %vm252_vm12 = vcmask 1039360   ;;  %vm353_vm13 = vcmask 908288   ;;  %vm392_vm14 = vcmask 900096  }
  0x17   : > { %vm430_vm15 = vcmask 785408   ;;  %vm454_vm1 = vcmask 777216   ;;  %vm291_vm3 = vcmask 1031168   ;;  %vm330_vm4 = vcmask 916480  }
  0x18   : > { %268 = vrot.lane.b32.xlu0 %v267_v22, %s672_s9  ;;  %v224_v34 = vsel %vm223_vm0, %v220_v32, %v222_v33 }
  0x19   : > { %368 = vrot.lane.b32.xlu1 %v367_v21, %s671_s8 }
  0x1c   : > { %469 = vrot.lane.b32.xlu2 %v468_v25, %s673_s10 }
  0x6e   : > { %v408_v1 = vpop.permute.xlu2 %407 }
  0x6f   : > { %v409_v2 = vrot.slane %v408_v1, 4 }
  0x71   : > { %v411_v12 = vsel %vm410_vm10, %v409_v2, %v408_v1 }
  0x76   : > { %v470_v13 = vpop.permute.xlu2 %469 }
  0x77   : > { %v471_v17 = vrot.slane %v470_v13, 4 }
  0x79   : > { %v473_v25 = vsel %vm472_vm11, %v471_v17, %v470_v13 }
  0x82   : > { %v206_v28 = vpop.permute.xlu0 %205 }
  0x83   : > { %v207_v30 = vrot.slane %v206_v28, 4  ;;  %v307_v43 = vpop.permute.xlu1 %306 }
  0x84   : > { %v308_v44 = vrot.slane %v307_v43, 4 }
  0x85   : > { %v209_v31 = vsel %vm208_vm5, %v207_v30, %v206_v28  ;;  %216 = vst.msk [vmem:[#allocation2 + $0x8] sm:$0xf] %vm199_vm2, %v207_v30  ;;  %vm492_vm2 = vcmask 769024  }
  0x86   : > { %215 = vst.msk [vmem:[#allocation2] sm:$0xff] %vm214_vm6, %v209_v31  ;;  %v310_v54 = vsel %vm309_vm8, %v308_v44, %v307_v43 }
  0x8a   : > { %v269_v36 = vpop.permute.xlu0 %268 }
  0x8b   : > { %v270_v39 = vrot.slane %v269_v36, 4  ;;  %v369_v55 = vpop.permute.xlu1 %368 }
  0x8c   : > { %v236_v35 = vld [vmem:[#allocation2 + $0x8] sm:$0xf]  ;;  %v370_v59 = vrot.slane %v369_v55, 4 }
  0x8d   : > { %v747_v37 = vld [vmem:[#allocation2] sm:$0xff]  ;;  %242 = vst [vmem:[#allocation1 + $0x11] ss:$2 sm:$0xff] %v236_v35  ;;  %v260_v40 = vld [vmem:[#allocation2 + $0x8] sm:$0xf]  ;;  %v272_v49 = vsel %vm271_vm7, %v270_v39, %v269_v36 }
  0x8e   : > { %v226_v38 = vmul.f32 %v224_v34, %v747_v37  ;;  %v276_v41 = vmul.f32 %v270_v39, %v260_v40  ;;  %v299_v47 = vld [vmem:[#allocation2 + $0x8] sm:$0xf]  ;;  %v275_v51 = vmul.f32 %v272_v49, %v747_v37  ;;  %v313_v58 = vmul.f32 %v310_v54, %v747_v37 }
  0x8f   : > { %v314_v48 = vmul.f32 %v308_v44, %v299_v47  ;;  %v338_v56 = vld [vmem:[#allocation2 + $0x8] sm:$0xf]  ;;  %v372_v7 = vsel %vm371_vm9, %v370_v59, %v369_v55  ;;  %v414_v16 = vmul.f32 %v411_v12, %v747_v37  ;;  %v476_v27 = vmul.f32 %v473_v25, %v747_v37 }
  0x90   : > { %228 = vst [vmem:[#allocation1] ss:$2 sm:$0xff] %v226_v38  ;;  %v361_v62 = vld [vmem:[#allocation2 + $0x8] sm:$0xf]  ;;  %v375_v9 = vmul.f32 %v372_v7, %v747_v37 }
  0x91   : > { %v376_v63 = vmul.f32 %v370_v59, %v361_v62  ;;  %v400_v5 = vld [vmem:[#allocation2 + $0x8] sm:$0xf] }
  0x92   : > { %v415_v6 = vmul.f32 %v409_v2, %v400_v5  ;;  %v438_v15 = vld [vmem:[#allocation2 + $0x8] sm:$0xf] }
  0x93   : > { %v462_v20 = vld [vmem:[#allocation2 + $0x8] sm:$0xf] }
  0x94   : > { %v245_v42 = vld.sshfl [vmem:[#allocation1 + $0x10] sm:$0xff pattern:$0x75316420]  ;;  %v477_v21 = vmul.f32 %v471_v17, %v462_v20 }
  0x95   : > { %281 = vst [vmem:[#allocation1 + $0x10] ss:$2 sm:$0xff] %v276_v41  ;;  %250 = vrot.lane.b32.xlu2 %v245_v42, %s675_s13 }
  0x97   : > { %v229_v45 = vld.sshfl [vmem:[#allocation1] sm:$0xff pattern:$0x75316420]  ;;  %v230_v46 = vld.sshfl [vmem:[#allocation1 + $0x8] sm:$0xff pattern:$0x75316420] }
  0x98   : > { %240 = vst [vmem:[#allocation1 + $0x1] ss:$2 sm:$0xff] %v747_v37 }
  0x99   : > { %233 = vst [vmem:[#allocation3 + $0x30] sm:$0xf] %v229_v45 }
  0x9a   : > { %234 = vst [vmem:[#allocation3] sm:$0xf] %v230_v46 }
  0x9c   : > { %v751_v50 = vld.sshfl [vmem:[#allocation1 + $0x10] sm:$0xff pattern:$0x75316420] }
  0x9d   : > { %320 = vst [vmem:[#allocation1 + $0x11] ss:$2 sm:$0xff] %v314_v48 }
  0x9f   : > { %v244_v52 = vld.sshfl [vmem:[#allocation1 + $0x8] sm:$0xff pattern:$0x75316420]  ;;  %v243_v53 = vld.sshfl [vmem:[#allocation1] sm:$0xff pattern:$0x75316420] }
  0xa0   : > { %248 = vrot.lane.b32.xlu1 %v244_v52, %s675_s13  ;;  %246 = vrot.lane.b32.xlu0 %v243_v53, %s675_s13  ;;  %279 = vst [vmem:[#allocation1] ss:$2 sm:$0xff] %v275_v51 }
  0xa4   : > { %v754_v57 = vld.sshfl [vmem:[#allocation1 + $0x10] sm:$0xff pattern:$0x75316420] }
  0xa5   : > { %343 = vst [vmem:[#allocation1 + $0x10] ss:$2 sm:$0xff] %v338_v56 }
  0xa7   : > { %v757_v60 = vld.sshfl [vmem:[#allocation1] sm:$0xff pattern:$0x75316420]  ;;  %v759_v61 = vld.sshfl [vmem:[#allocation1 + $0x8] sm:$0xff pattern:$0x75316420] }
  0xa8   : > { %318 = vst [vmem:[#allocation1 + $0x1] ss:$2 sm:$0xff] %v313_v58 }
  0xac   : > { %v346_v0 = vld.sshfl [vmem:[#allocation1 + $0x10] sm:$0xff pattern:$0x75316420] }
  0xad   : > { %351 = vrot.lane.b32.xlu2 %v346_v0, %s676_s14  ;;  %382 = vst [vmem:[#allocation1 + $0x11] ss:$2 sm:$0xff] %v376_v63  ;;  %v683_v63 = vmov 0  }
  0xae   : > { %659 = vset.pattern.permute.xlu0 %v683_v63 }
  0xaf   : > { %v761_v3 = vld.sshfl [vmem:[#allocation1] sm:$0xff pattern:$0x75316420]  ;;  %v322_v4 = vld.sshfl [vmem:[#allocation1 + $0x8] sm:$0xff pattern:$0x75316420] }
  0xb0   : > { %341 = vst [vmem:[#allocation1] ss:$2 sm:$0xff] %v747_v37 }
  0xb4   : > { %v385_v8 = vld.sshfl [vmem:[#allocation1 + $0x10] sm:$0xff pattern:$0x75316420] }
  0xb5   : > { %390 = vrot.lane.b32.xlu2 %v385_v8, %s677_s17  ;;  %420 = vst [vmem:[#allocation1 + $0x10] ss:$2 sm:$0xff] %v415_v6 }
  0xb7   : > { %v345_v10 = vld.sshfl [vmem:[#allocation1 + $0x8] sm:$0xff pattern:$0x75316420]  ;;  %v344_v11 = vld.sshfl [vmem:[#allocation1] sm:$0xff pattern:$0x75316420] }
  0xb8   : > { %349 = vrot.lane.b32.xlu1 %v345_v10, %s676_s14  ;;  %347 = vrot.lane.b32.xlu0 %v344_v11, %s676_s14  ;;  %380 = vst [vmem:[#allocation1 + $0x1] ss:$2 sm:$0xff] %v375_v9 }
  0xbc   : > { %v423_v14 = vld.sshfl [vmem:[#allocation1 + $0x10] sm:$0xff pattern:$0x75316420] }
  0xbd   : > { %428 = vrot.lane.b32.xlu2 %v423_v14, %s678_s18  ;;  %444 = vst [vmem:[#allocation1 + $0x11] ss:$2 sm:$0xff] %v438_v15 }
  0xbf   : > { %v384_v18 = vld.sshfl [vmem:[#allocation1 + $0x8] sm:$0xff pattern:$0x75316420]  ;;  %v383_v19 = vld.sshfl [vmem:[#allocation1] sm:$0xff pattern:$0x75316420] }
  0xc0   : > { %388 = vrot.lane.b32.xlu1 %v384_v18, %s677_s17  ;;  %386 = vrot.lane.b32.xlu0 %v383_v19, %s677_s17  ;;  %418 = vst [vmem:[#allocation1] ss:$2 sm:$0xff] %v414_v16 }
  0xc4   : > { %v447_v22 = vld.sshfl [vmem:[#allocation1 + $0x10] sm:$0xff pattern:$0x75316420] }
  0xc5   : > { %452 = vrot.lane.b32.xlu2 %v447_v22, %s679_s19  ;;  %482 = vst [vmem:[#allocation1 + $0x10] ss:$2 sm:$0xff] %v477_v21 }
  0xc7   : > { %v422_v23 = vld.sshfl [vmem:[#allocation1 + $0x8] sm:$0xff pattern:$0x75316420]  ;;  %v421_v24 = vld.sshfl [vmem:[#allocation1] sm:$0xff pattern:$0x75316420] }
  0xc8   : > { %426 = vrot.lane.b32.xlu1 %v422_v23, %s678_s18  ;;  %424 = vrot.lane.b32.xlu0 %v421_v24, %s678_s18  ;;  %442 = vst [vmem:[#allocation1 + $0x1] ss:$2 sm:$0xff] %v747_v37 }
  0xcc   : > { %v485_v26 = vld.sshfl [vmem:[#allocation1 + $0x10] sm:$0xff pattern:$0x75316420] }
  0xcd   : > { %490 = vrot.lane.b32.xlu2 %v485_v26, %s680_s20 }
  0xcf   : > { %v446_v28 = vld.sshfl [vmem:[#allocation1 + $0x8] sm:$0xff pattern:$0x75316420]  ;;  %v445_v29 = vld.sshfl [vmem:[#allocation1] sm:$0xff pattern:$0x75316420] }
  0xd0   : > { %450 = vrot.lane.b32.xlu1 %v446_v28, %s679_s19  ;;  %448 = vrot.lane.b32.xlu0 %v445_v29, %s679_s19  ;;  %480 = vst [vmem:[#allocation1] ss:$2 sm:$0xff] %v476_v27  ;;  %v501_v28 = vld [vmem:[%s789_s1] sm:$0xf] }
  0xd5   : > { %289 = vrot.lane.b32.xlu2 %v751_v50, %s681_s21 }
  0xd7   : > { %v484_v30 = vld.sshfl [vmem:[#allocation1 + $0x8] sm:$0xff pattern:$0x75316420]  ;;  %v483_v31 = vld.sshfl [vmem:[#allocation1] sm:$0xff pattern:$0x75316420] }
  0xd8   : > { %488 = vrot.lane.b32.xlu1 %v484_v30, %s680_s20  ;;  %486 = vrot.lane.b32.xlu0 %v483_v31, %s680_s20 }
  0xdd   : > { %328 = vrot.lane.b32.xlu2 %v754_v57, %s682_s22 }
  0xe0   : > { %287 = vrot.lane.b32.xlu1 %v759_v61, %s681_s21  ;;  %285 = vrot.lane.b32.xlu0 %v757_v60, %s681_s21  ;;  %v518_v60 = vld [vmem:[%s790_s2] sm:$0xff] }
  0xe8   : > { %326 = vrot.lane.b32.xlu1 %v322_v4, %s682_s22  ;;  %324 = vrot.lane.b32.xlu0 %v761_v3, %s682_s22 }
  0xef   : > { %v251_v32 = vpop.permute.xlu2 %250 }
  0xf0   : > { %521 = vperm.xlu0 %659, %v518_v60  }
 0x107   : > { %v352_v37 = vpop.permute.xlu2 %351 }
 0x10f   : > { %v391_v38 = vpop.permute.xlu2 %390 }
 0x112   : > { %v249_v33 = vpop.permute.xlu1 %248  ;;  %v247_v34 = vpop.permute.xlu0 %246 }
 0x113   : > { %v254_v35 = vsel %vm252_vm12, %v249_v33, %v251_v32  ;;  %v253_v36 = vsel %vm252_vm12, %v247_v34, %v249_v33 }
 0x114   : > { %258 = vst [vmem:[#allocation3] sm:$0xf0] %v254_v35 }
 0x115   : > { %257 = vst [vmem:[#allocation3 + $0x30] sm:$0xf0] %v253_v36 }
 0x117   : > { %v429_v43 = vpop.permute.xlu2 %428 }
 0x11b   : > { %v503_v22 = vld [vmem:[#allocation3] sm:$0xff] }
 0x11c   : > { %v502_v24 = vld [vmem:[#allocation3 + $0x30] sm:$0xff] }
 0x11f   : > { %v453_v50 = vpop.permute.xlu2 %452 }
 0x127   : > { %v491_v57 = vpop.permute.xlu2 %490 }
 0x12a   : > { %v350_v39 = vpop.permute.xlu1 %349  ;;  %v348_v40 = vpop.permute.xlu0 %347 }
 0x12b   : > { %v355_v41 = vsel %vm353_vm13, %v350_v39, %v352_v37  ;;  %v354_v42 = vsel %vm353_vm13, %v348_v40, %v350_v39 }
 0x12c   : > { %359 = vst [vmem:[#allocation3 + $0x28] sm:$0xf] %v355_v41 }
 0x12d   : > { %358 = vst [vmem:[#allocation3 + $0x48] sm:$0xf] %v354_v42 }
 0x12f   : > { %v290_v0 = vpop.permute.xlu2 %289 }
 0x132   : > { %v389_v44 = vpop.permute.xlu1 %388  ;;  %v387_v45 = vpop.permute.xlu0 %386 }
 0x133   : > { %v394_v46 = vsel %vm392_vm14, %v389_v44, %v391_v38  ;;  %v393_v47 = vsel %vm392_vm14, %v387_v45, %v389_v44 }
 0x134   : > { %398 = vst [vmem:[#allocation3 + $0x28] sm:$0xf0] %v394_v46 }
 0x135   : > { %397 = vst [vmem:[#allocation3 + $0x48] sm:$0xf0] %v393_v47 }
 0x137   : > { %v329_v14 = vpop.permute.xlu2 %328 }
 0x13a   : > { %v427_v48 = vpop.permute.xlu1 %426  ;;  %v425_v49 = vpop.permute.xlu0 %424 }
 0x13b   : > { %v432_v51 = vsel %vm430_vm15, %v427_v48, %v429_v43  ;;  %v431_v52 = vsel %vm430_vm15, %v425_v49, %v427_v48  ;;  %v507_v13 = vld [vmem:[#allocation3 + $0x28] sm:$0xff] }
 0x13c   : > { %436 = vst [vmem:[#allocation3 + $0x20] sm:$0xf] %v432_v51  ;;  %v506_v15 = vld [vmem:[#allocation3 + $0x48] sm:$0xff] }
 0x13d   : > { %435 = vst [vmem:[#allocation3 + $0x8] sm:$0xf] %v431_v52 }
 0x142   : > { %v451_v53 = vpop.permute.xlu1 %450  ;;  %v449_v54 = vpop.permute.xlu0 %448 }
 0x143   : > { %v456_v55 = vsel %vm454_vm1, %v451_v53, %v453_v50  ;;  %v455_v56 = vsel %vm454_vm1, %v449_v54, %v451_v53 }
 0x144   : > { %460 = vst [vmem:[#allocation3 + $0x20] sm:$0xf0] %v456_v55 }
 0x145   : > { %459 = vst [vmem:[#allocation3 + $0x8] sm:$0xf0] %v455_v56 }
 0x14a   : > { %v489_v58 = vpop.permute.xlu1 %488  ;;  %v487_v59 = vpop.permute.xlu0 %486 }
 0x14b   : > { %v494_v61 = vsel %vm492_vm2, %v489_v58, %v491_v57  ;;  %v493_v62 = vsel %vm492_vm2, %v487_v59, %v489_v58  ;;  %v509_v10 = vld [vmem:[#allocation3 + $0x20] sm:$0xff] }
 0x14c   : > { %498 = vst [vmem:[#allocation3 + $0x38] sm:$0xf] %v494_v61  ;;  %v508_v12 = vld [vmem:[#allocation3 + $0x8] sm:$0xff]  ;;  %v515_v16 = vpack.c.bf16 %v509_v10, %v507_v13 }
 0x14d   : > { %497 = vst [vmem:[#allocation3 + $0x40] sm:$0xf] %v493_v62  ;;  %v514_v19 = vpack.c.bf16 %v508_v12, %v506_v15 }
 0x152   : > { %v288_v1 = vpop.permute.xlu1 %287  ;;  %v286_v2 = vpop.permute.xlu0 %285 }
 0x153   : > { %v293_v3 = vsel %vm291_vm3, %v288_v1, %v290_v0  ;;  %v292_v4 = vsel %vm291_vm3, %v286_v2, %v288_v1  ;;  %v511_v5 = vld [vmem:[#allocation3 + $0x38] sm:$0xff] }
 0x154   : > { %297 = vst [vmem:[#allocation3 + $0x10] sm:$0xf] %v293_v3  ;;  %v510_v6 = vld [vmem:[#allocation3 + $0x40] sm:$0xff]  ;;  %v517_v7 = vpack.c.bf16 %v511_v5, %v511_v5 }
 0x155   : > { %296 = vst [vmem:[#allocation3 + $0x18] sm:$0xf] %v292_v4  ;;  %v516_v8 = vpack.c.bf16 %v510_v6, %v510_v6 }
 0x156   : > { %v532_v9 = vsel %vm223_vm0, %v517_v7, 0 }
 0x157   : > { %v529_v11 = vsel %vm223_vm0, %v516_v8, 0  ;;  %552 = vmatpush.bf16.msra.mxu1 %v532_v9  ;;  %vm524_vm0 = vcmask 326656  }
 0x158   : > { %539 = vmatpush.bf16.msra.mxu0 %v529_v11 }
 0x15a   : > { %v327_v17 = vpop.permute.xlu1 %326  ;;  %v325_v18 = vpop.permute.xlu0 %324 }
 0x15b   : > { %v332_v20 = vsel %vm330_vm4, %v327_v17, %v329_v14  ;;  %v331_v21 = vsel %vm330_vm4, %v325_v18, %v327_v17  ;;  %553 = vmatpush.bf16.msra.mxu1 %v515_v16 }
 0x15c   : > { %336 = vst [vmem:[#allocation3 + $0x10] sm:$0xf0] %v332_v20  ;;  %540 = vmatpush.bf16.msra.mxu0 %v514_v19 }
 0x15d   : > { %335 = vst [vmem:[#allocation3 + $0x18] sm:$0xf0] %v331_v21 }
 0x162   : > { %v522_v29 = vpop.permute.xlu0 %521 }
 0x163   : > { %v505_v23 = vld [vmem:[#allocation3 + $0x10] sm:$0xff] }
 0x164   : > { %v504_v25 = vld [vmem:[#allocation3 + $0x18] sm:$0xff]  ;;  %v513_v26 = vpack.c.bf16 %v505_v23, %v503_v22 }
 0x165   : > { %v512_v27 = vpack.c.bf16 %v504_v25, %v502_v24 }
 0x166   : > { %554 = vmatpush.bf16.msra.mxu1 %v513_v26 }
 0x167   : > { %541 = vmatpush.bf16.msra.mxu0 %v512_v27 }
 0x169   : > { %630 = vmatmul.msk.bf16.vlgmr.msra.gmra.mxu1 %vm524_vm0, %v501_v28 }
 0x16a   : > { %629 = vmatmul.msk.bf16.vlgmr.msra.gmra.mxu0 %vm524_vm0, %v501_v28 }
 0x1e6   : > { %v556_v30 = vpop.f32.mrf.mxu1 }
 0x1e7   : > { %v543_v31 = vpop.f32.mrf.mxu0  ;;  %v557_v32 = vadd.f32 %v556_v30, %v522_v29 }
 0x1e8   : > { %v544_v33 = vadd.f32 %v543_v31, %v522_v29 }
 0x1e9   : > { %561 = vst [vmem:[%s197_s30 + $0x8] sm:$0xff] %v557_v32 }
 0x1ea   : > { %560 = vst [vmem:[%s197_s30] sm:$0xff] %v544_v33 }
 0x1ee   : > { %v558_v34 = vpop.f32.mrf.mxu1 }
 0x1ef   : > { %v545_v35 = vpop.f32.mrf.mxu0 }
 0x1f0 PF: > { %s14_s15 = sadd.s32 1, %s666_s15  }
 0x1f1   : > { %p11_p4 = scmp.ge.s32.totalorder %s14_s15, 4  }
 0x1f3   :  { %13 = sbr.rel (!%p11_p4) target bundleno = 1 (0x1), region = 79 }

</bundles_post_ra>
